<compile_context>
chip_gen: v5e
topology: v5e:2x2
jax: 0.10.0
libtpu: 0.0.40
codegen_flags: <defaults>
</compile_context>

<pallas_src>
import jax
import jax.numpy as jnp
from jax.experimental import pallas as pl
from jax.experimental.pallas import tpu as pltpu


def spatial_attention_kernel(x_ref, w_ref, b_ref, o_ref):
    # x_ref: (1, C, hw_tile) VMEM  -- channels on sublanes, spatial on lanes
    # w_ref: (C, 1)          VMEM  -- 1x1-conv weight, resident across the grid
    # b_ref: (1, 1)          SMEM  -- conv bias (scalar)
    # o_ref: (1, C, hw_tile) VMEM
    x = x_ref[0]                                     # (C, hw_tile)
    w = w_ref[...]                                   # (C, 1) -> broadcasts over lanes
    # 1x1 conv with a single output channel == weighted sum over the channel axis.
    logits = jnp.sum(x * w, axis=0, keepdims=True) + b_ref[0, 0]   # (1, hw_tile)
    attn = jax.nn.sigmoid(logits)                    # EUP transcendental
    o_ref[0] = (x * attn).astype(o_ref.dtype)        # broadcast over channels


def spatial_attention(x, w, b, *, hw_tile=None, interpret=False):
    """
    x: (B, C, H, W) float32
    w: Conv2d(C, 1, kernel_size=1) weight — shape (1, C, 1, 1), (C,) or (C, 1)
    b: conv bias — shape (1,) or scalar
    returns (B, C, H, W)
    """
    B, C, H, W = x.shape
    HW = H * W

    w2 = jnp.asarray(w, x.dtype).reshape(C, 1)
    b2 = jnp.asarray(b, x.dtype).reshape(1, 1)

    itemsize = jnp.dtype(x.dtype).itemsize
    if hw_tile is None:
        # Target ~4 MiB input blocks (lane-dense multiple of 128), capped at H*W.
        target_lanes = max(128, ((4 * 1024 * 1024) // (C * itemsize)) // 128 * 128)
        hw_tile = min(target_lanes, pl.cdiv(HW, 128) * 128)

    HW_pad = pl.cdiv(HW, hw_tile) * hw_tile
    x3 = x.reshape(B, C, HW)                # free reshape, no transpose
    if HW_pad != HW:
        # Zero-pad the spatial (lane) axis; padded lanes are sliced off afterwards.
        x3 = jnp.pad(x3, ((0, 0), (0, 0), (0, HW_pad - HW)))

    n_hw = HW_pad // hw_tile
    block_bytes = C * hw_tile * itemsize
    # in + out, double-buffered, plus headroom; safe on v5e/v6e (128 MiB) and v7x (64 MiB).
    vmem_limit = min(int(max(32 * 1024 * 1024, 5 * block_bytes)), 100 * 1024 * 1024)

    out = pl.pallas_call(
        spatial_attention_kernel,
        out_shape=jax.ShapeDtypeStruct((B, C, HW_pad), x.dtype),
        grid_spec=pltpu.PrefetchScalarGridSpec(
            num_scalar_prefetch=0,
            grid=(B, n_hw),
            in_specs=[
                pl.BlockSpec((1, C, hw_tile), lambda bi, j: (bi, 0, j)),   # x tile
                pl.BlockSpec((C, 1), lambda bi, j: (0, 0)),                # weight (resident)
                pl.BlockSpec(memory_space=pltpu.MemorySpace.SMEM),         # bias scalar
            ],
            out_specs=pl.BlockSpec((1, C, hw_tile), lambda bi, j: (bi, 0, j)),
        ),
        compiler_params=pltpu.CompilerParams(
            dimension_semantics=("parallel", "parallel"),
            vmem_limit_bytes=vmem_limit,
        ),
        cost_estimate=pl.CostEstimate(
            flops=3 * B * C * HW_pad,
            transcendentals=B * HW_pad,
            bytes_accessed=2 * B * C * HW_pad * itemsize,
        ),
        interpret=interpret,
    )(x3, w2, b2)

    if HW_pad != HW:
        out = out[:, :, :HW]
    return out.reshape(B, C, H, W)


def spatial_attention_ref(x, w, b):
    # pure-JAX reference matching the PyTorch forward
    wc = jnp.asarray(w).reshape(-1)                               # (C,)
    attn = jnp.einsum("bchw,c->bhw", x, wc) + jnp.asarray(b).reshape(())
    attn = jax.nn.sigmoid(attn)[:, None, :, :]                    # (B,1,H,W)
    return x * attn


if __name__ == "__main__":
    key = jax.random.PRNGKey(0)
    B, C, H, W = 2, 32, 16, 16   # hidden_dim = 32

    kx, kw, kb = jax.random.split(key, 3)
    x = jax.random.normal(kx, (B, C, H, W), dtype=jnp.float32)
    # Conv2d(hidden_dim, 1, kernel_size=1) parameters: weight (1, C, 1, 1), bias (1,)
    w = jax.random.normal(kw, (1, C, 1, 1), dtype=jnp.float32) * 0.1
    b = jax.random.normal(kb, (1,), dtype=jnp.float32) * 0.1

    out = spatial_attention(x, w, b)
    out = jax.block_until_ready(out)

    ref = spatial_attention_ref(x, w, b)
    assert out.shape == (B, C, H, W)
    assert jnp.allclose(out, ref, atol=1e-5, rtol=1e-5), "mismatch vs reference"

    print("KERNEL_OK")
</pallas_src>

<mosaic_0001>
module attributes {stable_mosaic.version = 11 : i64} {
  func.func @spatial_attention_kernel(%arg0: i32, %arg1: i32, %arg2: memref<1x32x256xf32, #tpu.memory_space<vmem>>, %arg3: memref<32x1xf32, #tpu.memory_space<vmem>>, %arg4: memref<1x1xf32, #tpu.memory_space<smem>>, %arg5: memref<1x32x256xf32, #tpu.memory_space<vmem>>) attributes {dimension_semantics = [#tpu.dimension_semantics<parallel>, #tpu.dimension_semantics<parallel>], iteration_bounds = array<i64: 2, 1>, scalar_prefetch = 0 : i64, scratch_operands = 0 : i64, tpu.core_type = #tpu.core_type<tc>, window_params = [{transform_indices = @transform_0, window_bounds = array<i64: 1, 32, 256>}, {pipeline_mode = #tpu.pipeline_mode<synchronous>, transform_indices = @transform_1, window_bounds = array<i64: 32, 1>}, {transform_indices = @transform_2, window_bounds = array<i64: 1, 1>}, {transform_indices = @transform_3, window_bounds = array<i64: 1, 32, 256>}]} {
    %c0 = arith.constant 0 : index
    %c0_0 = arith.constant 0 : index
    %c0_1 = arith.constant 0 : index
    %0 = vector.load %arg2[%c0, %c0_0, %c0_1] : memref<1x32x256xf32, #tpu.memory_space<vmem>>, vector<1x32x256xf32>
    %1 = vector.shape_cast %0 : vector<1x32x256xf32> to vector<32x256xf32>
    %c0_2 = arith.constant 0 : index
    %c0_3 = arith.constant 0 : index
    %2 = vector.load %arg3[%c0_2, %c0_3] : memref<32x1xf32, #tpu.memory_space<vmem>>, vector<32x1xf32>
    %3 = vector.broadcast %2 : vector<32x1xf32> to vector<32x256xf32>
    %4 = arith.mulf %1, %3 : vector<32x256xf32>
    %cst = arith.constant dense<0.000000e+00> : vector<256xf32>
    %5 = vector.multi_reduction <add>, %4, %cst [0] : vector<32x256xf32> to vector<256xf32>
    %6 = vector.shape_cast %5 : vector<256xf32> to vector<1x256xf32>
    %c0_4 = arith.constant 0 : index
    %c0_5 = arith.constant 0 : index
    %7 = memref.load %arg4[%c0_4, %c0_5] : memref<1x1xf32, #tpu.memory_space<smem>>
    %8 = vector.broadcast %7 : f32 to vector<1x256xf32>
    %9 = arith.addf %6, %8 : vector<1x256xf32>
    %10 = arith.negf %9 : vector<1x256xf32>
    %11 = math.exp %10 : vector<1x256xf32>
    %cst_6 = arith.constant 1.000000e+00 : f32
    %12 = vector.broadcast %cst_6 : f32 to vector<1x256xf32>
    %13 = arith.addf %12, %11 : vector<1x256xf32>
    %14 = arith.divf %12, %13 : vector<1x256xf32>
    %15 = vector.broadcast %14 : vector<1x256xf32> to vector<32x256xf32>
    %16 = arith.mulf %1, %15 : vector<32x256xf32>
    %c0_7 = arith.constant 0 : index
    %c0_8 = arith.constant 0 : index
    %c0_9 = arith.constant 0 : index
    %17 = vector.load %arg5[%c0_7, %c0_8, %c0_9] : memref<1x32x256xf32, #tpu.memory_space<vmem>>, vector<1x32x256xf32>
    %18 = vector.shape_cast %17 : vector<1x32x256xf32> to vector<32x256xf32>
    %19 = vector.shape_cast %16 : vector<32x256xf32> to vector<1x32x256xf32>
    tpu.vector_store %arg5[%c0_7, %c0_8, %c0_9], %19 {strides = array<i32>} : memref<1x32x256xf32, #tpu.memory_space<vmem>>, vector<1x32x256xf32>,
    return
  }
  func.func @transform_0(%arg0: i32, %arg1: i32) -> (i32, i32, i32) {
    %c0_i32 = arith.constant 0 : i32
    %c0_i32_0 = arith.constant 0 : i32
    return %arg0, %c0_i32, %arg1 : i32, i32, i32
  }
  func.func @transform_1(%arg0: i32, %arg1: i32) -> (i32, i32) {
    %c0_i32 = arith.constant 0 : i32
    %c0_i32_0 = arith.constant 0 : i32
    %c0_i32_1 = arith.constant 0 : i32
    return %c0_i32, %c0_i32_0 : i32, i32
  }
  func.func @transform_2(%arg0: i32, %arg1: i32) -> (i32, i32) {
    %c0_i32 = arith.constant 0 : i32
    %c0_i32_0 = arith.constant 0 : i32
    %c0_i32_1 = arith.constant 0 : i32
    return %c0_i32, %c0_i32_0 : i32, i32
  }
  func.func @transform_3(%arg0: i32, %arg1: i32) -> (i32, i32, i32) {
    %c0_i32 = arith.constant 0 : i32
    %c0_i32_0 = arith.constant 0 : i32
    return %arg0, %c0_i32, %arg1 : i32, i32, i32
  }
}

</mosaic_0001>

<bundles_post_ra>
// kernel: tpu_custom_call.1
= control target key start
LH: loop header
LB: loop body
LE: loop exit
PB: predicated region body
PF: predicated region fallthrough
CT: control target
= control target key end

     0   :  { %s839_s0 = inlined_call_operand.hbm [shape: f32[2,32,256], index: 0, kind: input, shape index: {}]   ;;  %s840_s1 = inlined_call_operand.vmem [shape: f32[32,1], index: 1, kind: input, shape index: {}]   ;;  %s841_s2 = inlined_call_operand.<no memory space> [shape: f32[1,1], index: 2, kind: input, shape index: {}]   ;;  %s842_s3 = inlined_call_operand.hbm [shape: f32[2,32,256], index: 3, kind: output, shape index: {}]  }
   0x1   :  { %8 = sst [smem:[#allocation2]] %s841_s2 }
   0x2   :  { %9 = vsyncpa [#allocation4], 0 }
   0x3   :  { %11 = vsyncpa [#allocation4 + $0x1], 0 }
   0x4   :  { %12 = vsyncpa [#allocation5], 0 }
   0x5   :  { %14 = vsyncpa [#allocation5 + $0x1], 0  ;;  %s671_s14 = smov 0   ;;  %s673_s15 = smov 0  }
   0x6   :  { %s675_s16 = smov 0   ;;  %s677_s17 = smov 0  }
   0x7   :  { %s679_s18 = smov 0   ;;  %s681_s19 = smov 0  }
   0x8 LB: > { %s433_s2 = sadd.s32 4294967295, %s641_s19   ;;  %s434_s20 = sadd.s32 4294967294, %s641_s19   ;;  %s641_s19 = sphi %s681_s19, %s20_s19   ;;  %s637_s18 = sphi %s679_s18, %s851_s18   ;;  %s633_s17 = sphi %s677_s17, %s850_s17   ;;  %s629_s16 = sphi %s675_s16, %s849_s16   ;;  %s625_s15 = sphi %s673_s15, %s848_s15   ;;  %s621_s14 = sphi %s671_s14, %s847_s14  }
   0x9   : > { %s32_s21 = sadd.s32 1, %s637_s18  ;;  %s41_s22 = sadd.s32 1, %s629_s16 }
   0xa   : > { %p34_p0 = scmp.ge.s32.totalorder %s32_s21, 2  ;;  %p48_p1 = scmp.ne.s32.totalorder %s629_s16, %s625_s15 }
   0xb   : > { %p49_p2 = scmp.eq.s32.totalorder %s641_s19, 0  ;;  %p54_p3 = scmp.ne.s32.totalorder %s625_s15, %s621_s14 }
   0xc   : > { %s853_s21 = smov (%p34_p0, %s32_s21), 0  ;;  %p55_p5 = scmp.eq.s32.totalorder %s433_s2, 0 }
   0xd   : > { %p712_p4 = por %p49_p2, %p48_p1  ;;  %s36_s24 = ssub.s32 %s637_s18, %s853_s21 }
   0xe   : > { %p122_p6 = scmp.eq.s32.totalorder %s433_s2, 1  ;;  %p39_p7 = scmp.eq.s32.totalorder %s36_s24, 0 }
   0xf   : > { %p718_p8 = por %p55_p5, %p54_p3  ;;  %p128_p10 = scmp.eq.s32.totalorder %s434_s20, 1 }
  0x10   : > { %p722_p9 = por %p122_p6, %p48_p1  ;;  %p436_p12 = scmp.ge.s32.totalorder %s641_s19, 2 }
  0x11   : > { %s727_s27 = scalar_select %p39_p7, %s629_s16, %s41_s22  }
  0x12   : > { %p729_p11 = por %p128_p10, %p54_p3  ;;  %p464_p13 = scmp.lt.s32.totalorder %s641_s19, 2 }
  0x13   : > { %s154_s29 = sand.u32 1, %s629_s16   ;;  %s450_s4 = sshll.u32 %s637_s18, 6 }
  0x14   : > { %s437_s30 = sshll.u32 %s154_s29, 6  ;;  %s165_s7 = scalar_lea.hbm %s839_s0, %s450_s4 }
  0x15   : > { %s158_s8 = scalar_lea.vmem [#allocation3], %s437_s30  ;;  %s166_s10 = sshll.u32 %s165_s7, 4  ;;  %s167_s10 = int_to_ptr.hbm [resolvable:$true] %s166_s10 }
  0x16   : > { %s168_s9 = sshll.u32 %s158_s8, 4  ;;  %p457_p0 = pnand %p464_p13, %p712_p4  ;;  %s169_s9 = int_to_ptr.vmem [resolvable:$true] %s168_s9 }
  0x17   : > { %p440_p1 = scmp.ge.s32.totalorder %s641_s19, 1  ;;  %s155_s11 = scalar_lea.sflag [#allocation4], %s154_s29 }
  0x18   : > { %s643_s12 = smov 256   ;;  %s644_s13 = smov 16  }
  0x19   : > { %459 = dma.hbm_to_vmem [thread:$0]  (!%p457_p0), %s167_s10, 1024, %s169_s9, %s155_s11, %s643_s12, %s643_s12, %s644_s13  }
  0x1a   : > { %p176_p2 = scmp.lt.s32.totalorder %s641_s19, 3 }
  0x1c   : > { %p177_p3 = pnand %p440_p1, %p176_p2 }
  0x1d   : > { %s745_s2 = sand.u32 (!%p177_p3), 1, %s625_s15  }
  0x1e   : > { %180 = sbr.rel (%p177_p3) target bundleno = 224 (0xe0), region = 32  ;;  %s441_s20 = sshll.u32 (!%p177_p3), %s745_s2, 6 }
  0x1f   : > { %s183_s22 = scalar_lea.sflag (!%p177_p3), [#allocation4], %s745_s2  ;;  %s186_s23 = scalar_lea.vmem (!%p177_p3), [#allocation3], %s441_s20 }
  0x23   : > { %612 = dma.done.wait (%p718_p8), %s183_s22, 1024  }
  0x24   : > { %614 = vsyncadd (%p718_p8), %s183_s22, 4294966272  ;;  %v645_v0 = vmov 0   ;;  %v222_v1 = vld [vmem:[%s840_s1 + $0x10] sm:$0xff]  ;;  %v220_v2 = vld [vmem:[%s840_s1] sm:$0xff]  ;;  %s270_s8 = sld [smem:[#allocation2]]  ;;  %s451_s9 = sshll.u32 %s633_s17, 6 }
  0x25   : > { %520 = vset.pattern.permute.xlu1 %v645_v0  ;;  %519 = vset.pattern.permute.xlu0 %v645_v0  ;;  %v223_v3 = vld [vmem:[%s840_s1 + $0x18] sm:$0xff]  ;;  %v221_v4 = vld [vmem:[%s840_s1 + $0x8] sm:$0xff]  ;;  %v767_v7 = vld [vmem:[%s186_s23] sm:$0xff]  ;;  %s342_s12 = scalar_lea.hbm %s842_s3, %s451_s9  ;;  %s209_s17 = scalar_lea.vmem [#allocation6], %s441_s20 }
  0x26   : > { %236 = vperm.xlu1 %520, %v222_v1   ;;  %226 = vperm.xlu0 %519, %v220_v2   ;;  %v769_v8 = vld [vmem:[%s186_s23 + $0x8] sm:$0xff]  ;;  %v771_v9 = vld [vmem:[%s186_s23 + $0x10] sm:$0xff]  ;;  %v773_v10 = vld [vmem:[%s186_s23 + $0x18] sm:$0xff]  ;;  %s343_s13 = sshll.u32 %s209_s17, 4  ;;  %s345_s22 = sshll.u32 %s342_s12, 4  ;;  %s344_s13 = int_to_ptr.vmem [resolvable:$true] %s343_s13  ;;  %s346_s22 = int_to_ptr.hbm [resolvable:$true] %s345_s22 }
  0x27   : > { %v775_v11 = vld [vmem:[%s186_s23 + $0x20] sm:$0xff]  ;;  %v777_v12 = vld [vmem:[%s186_s23 + $0x28] sm:$0xff]  ;;  %v783_v19 = vld [vmem:[%s186_s23 + $0x30] sm:$0xff]  ;;  %s329_s20 = scalar_lea.sflag [#allocation5], %s745_s2  ;;  %s579_s4 = scalar_lea.hbm %s842_s3, 128 }
  0x28   : > { %v785_v20 = vld [vmem:[%s186_s23 + $0x38] sm:$0xff]  ;;  %s573_s23 = sshra.s32 %s346_s22, 4  ;;  %s574_s23 = int_to_ptr.hbm [resolvable:$true] %s573_s23 }
  0x29   : > { %s575_s24 = scalar_lea.hbm %s574_s23, 64  ;;  %p580_p7 = scmp.lt.s32.totalorder %s574_s23, %s842_s3 }
  0x2a   : > { %v271_v41 = vstv %s270_s8  ;;  %p576_p4 = scmp.ne.s32.totalorder %s574_s23, %s575_s24  ;;  %p581_p8 = scmp.lt.s32.totalorder %s579_s4, %s575_s24 }
  0x2c   : > { %p577_p5 = pnand %p576_p4, %p722_p9  ;;  %p582_p10 = por %p581_p8, %p580_p7 }
  0x2e   : > { %241 = vperm.xlu1 %520, %v223_v3   ;;  %231 = vperm.xlu0 %519, %v221_v4   ;;  %p578_p6 = pneg %p577_p5 }
  0x30   : > { %p583_p13 = pnand %p582_p10, %p578_p6 }
  0x98   : > { %v237_v5 = vpop.permute.xlu1 %236  ;;  %v227_v6 = vpop.permute.xlu0 %226 }
  0x99   : > { %v244_v14 = vmul.f32 %v227_v6, %v767_v7  ;;  %v245_v15 = vmul.f32 %v227_v6, %v769_v8  ;;  %v248_v21 = vmul.f32 %v237_v5, %v775_v11  ;;  %v249_v22 = vmul.f32 %v237_v5, %v777_v12 }
  0xa0   : > { %v232_v13 = vpop.permute.xlu0 %231  ;;  %v242_v18 = vpop.permute.xlu1 %241 }
  0xa1   : > { %v246_v16 = vmul.f32 %v232_v13, %v771_v9  ;;  %v247_v17 = vmul.f32 %v232_v13, %v773_v10  ;;  %v250_v25 = vmul.f32 %v242_v18, %v783_v19  ;;  %v251_v26 = vmul.f32 %v242_v18, %v785_v20 }
  0xa3   : > { %v252_v23 = vadd.f32 %v246_v16, %v244_v14  ;;  %v261_v24 = vadd.f32 %v247_v17, %v245_v15 }
  0xa5   : > { %v253_v27 = vadd.f32 %v252_v23, %v248_v21  ;;  %v262_v28 = vadd.f32 %v261_v24, %v249_v22 }
  0xa7   : > { %v254_v29 = vadd.f32 %v253_v27, %v250_v25  ;;  %v263_v30 = vadd.f32 %v262_v28, %v251_v26 }
  0xa9   : > { %v255_v31 = vrot.slane %v254_v29, 4  ;;  %v264_v32 = vrot.slane %v263_v30, 4 }
  0xab   : > { %v256_v33 = vadd.f32 %v255_v31, %v254_v29  ;;  %v265_v34 = vadd.f32 %v264_v32, %v263_v30 }
  0xad   : > { %v257_v35 = vrot.slane %v256_v33, 2  ;;  %v266_v36 = vrot.slane %v265_v34, 2 }
  0xaf   : > { %v258_v37 = vadd.f32 %v257_v35, %v256_v33  ;;  %v267_v38 = vadd.f32 %v266_v36, %v265_v34 }
  0xb1   : > { %v259_v39 = vrot.slane %v258_v37, 1  ;;  %v268_v40 = vrot.slane %v267_v38, 1 }
  0xb3   : > { %v260_v42 = vadd.f32 %v259_v39, %v258_v37  ;;  %v269_v43 = vadd.f32 %v268_v40, %v267_v38 }
  0xb5   : > { %v272_v44 = vadd.f32 %v271_v41, %v260_v42  ;;  %v273_v45 = vadd.f32 %v271_v41, %v269_v43 }
  0xb7   : > { %v443_v46 = vmul.f32 -1.442695, %v272_v44  ;;  %v444_v47 = vmul.f32 -1.442695, %v273_v45 }
  0xb9   : > { %521 = vpow2.f32 %v443_v46 }
  0xba   : > { %523 = vpow2.f32 %v444_v47 }
  0xbf   : > { %v522_v48 = vpop.eup %521 }
  0xc0   : > { %v524_v49 = vpop.eup %523  ;;  %v280_v50 = vadd.f32 1.0, %v522_v48 }
  0xc1   : > { %v281_v51 = vadd.f32 1.0, %v524_v49 }
  0xc2   : > { %525 = vrcp.f32 %v280_v50  ;;  %v293_v57 = vand.u32 2147483648, %v280_v50  ;;  %v291_v60 = vand.u32 2147483647, %v280_v50  ;;  %vm287_vm2 = vweird.f32 %v280_v50 }
  0xc3   : > { %527 = vrcp.f32 %v281_v51  ;;  %v308_v61 = vand.u32 2147483648, %v281_v51  ;;  %v306_v63 = vand.u32 2147483647, %v281_v51  ;;  %vm302_vm4 = vweird.f32 %v281_v51 }
  0xc4   : > { %v294_v1 = vor.u32 1.1754944e-38, %v293_v57  ;;  %vm292_vm5 = vcmp.eq.f32.partialorder %v291_v60, 8.507059e+37 }
  0xc5   : > { %v309_v4 = vor.u32 1.1754944e-38, %v308_v61  ;;  %vm307_vm7 = vcmp.eq.f32.partialorder %v306_v63, 8.507059e+37 }
  0xc8   : > { %v526_v52 = vpop.eup %525 }
  0xc9   : > { %v528_v53 = vpop.eup %527  ;;  %v283_v54 = vmul.f32 %v526_v52, %v280_v50  ;;  %vm288_vm0 = vweird.f32 %v526_v52 }
  0xca   : > { %v298_v55 = vmul.f32 %v528_v53, %v281_v51  ;;  %vm303_vm1 = vweird.f32 %v528_v53  ;;  %vm289_vm3 = vmor %vm287_vm2, %vm288_vm0 }
  0xcb   : > { %v284_v56 = vsub.f32 1.0, %v283_v54  ;;  %vm304_vm6 = vmor %vm302_vm4, %vm303_vm1 }
  0xcc   : > { %v299_v58 = vsub.f32 1.0, %v298_v55 }
  0xcd   : > { %v285_v59 = vmul.f32 %v526_v52, %v284_v56 }
  0xce   : > { %v300_v62 = vmul.f32 %v528_v53, %v299_v58 }
  0xcf   : > { %v286_v0 = vadd.f32 %v526_v52, %v285_v59 }
  0xd0   : > { %v301_v2 = vadd.f32 %v528_v53, %v300_v62 }
  0xd1   : > { %v290_v3 = vsel %vm289_vm3, %v526_v52, %v286_v0 }
  0xd2   : > { %v295_v5 = vsel %vm292_vm5, %v294_v1, %v290_v3  ;;  %v305_v6 = vsel %vm304_vm6, %v528_v53, %v301_v2 }
  0xd3   : > { %v310_v13 = vsel %vm307_vm7, %v309_v4, %v305_v6  ;;  %v312_v14 = vmul.f32 %v295_v5, %v767_v7  ;;  %v314_v15 = vmul.f32 %v295_v5, %v771_v9  ;;  %v316_v18 = vmul.f32 %v295_v5, %v775_v11 }
  0xd4   : > { %v313_v16 = vmul.f32 %v310_v13, %v769_v8  ;;  %v315_v17 = vmul.f32 %v310_v13, %v773_v10  ;;  %v317_v21 = vmul.f32 %v310_v13, %v777_v12  ;;  %v318_v7 = vmul.f32 %v295_v5, %v783_v19 }
  0xd5   : > { %320 = vst [vmem:[%s209_s17] sm:$0xff] %v312_v14  ;;  %v319_v8 = vmul.f32 %v310_v13, %v785_v20 }
  0xd6   : > { %321 = vst [vmem:[%s209_s17 + $0x8] sm:$0xff] %v313_v16 }
  0xd7   : > { %322 = vst [vmem:[%s209_s17 + $0x10] sm:$0xff] %v314_v15 }
  0xd8   : > { %323 = vst [vmem:[%s209_s17 + $0x18] sm:$0xff] %v315_v17 }
  0xd9   : > { %324 = vst [vmem:[%s209_s17 + $0x20] sm:$0xff] %v316_v18 }
  0xda   : > { %325 = vst [vmem:[%s209_s17 + $0x28] sm:$0xff] %v317_v21 }
  0xdb   : > { %326 = vst [vmem:[%s209_s17 + $0x30] sm:$0xff] %v318_v7 }
  0xdc   : > { %327 = vst [vmem:[%s209_s17 + $0x38] sm:$0xff] %v319_v8 }
  0xdd   : > { %586 = shalt.err (!%p583_p13)
}
  0xde   : > { %s646_s2 = smov 256   ;;  %s647_s7 = smov 16  }
  0xdf   : > { %454 = dma.vmem_to_hbm [thread:$0]  (%p722_p9), %s344_s13, 1024, %s346_s22, %s329_s20, %s646_s2, %s646_s2, %s647_s7  }
  0xe0 PF: > { %s360_s25 = sand.u32 1, %s621_s14   ;;  %p461_p0 = pnand %p436_p12, %p729_p11 }
  0xe1   : > { %s361_s8 = scalar_lea.sflag [#allocation5], %s360_s25 }
  0xe2   : > { %p462_p1 = pneg %p461_p0 }
  0xe4   : > { %616 = dma.done.wait (%p462_p1), %s361_s8, 1024  }
  0xe5   : > { %618 = vsyncadd (%p462_p1), %s361_s8, 4294966272  ;;  %s20_s19 = sadd.s32 1, %s641_s19   ;;  %s847_s14 = smov %s625_s15 }
  0xe6   : > { %p17_p2 = scmp.ge.s32.totalorder %s20_s19, 4   ;;  %s848_s15 = smov %s629_s16 }
  0xe7   : > { %s849_s16 = smov %s727_s27  ;;  %s850_s17 = smov %s637_s18 }
  0xe8   : > { %s851_s18 = smov %s853_s21  ;;  %19 = sbr.rel (!%p17_p2) target bundleno = 8 (0x8), region = 77 }
  0xed   :  { %367 = vsyncpa [#allocation4], 1 }
  0xee   :  { %369 = vsyncpa [#allocation4 + $0x1], 1 }
  0xef   :  { %370 = vsyncpa [#allocation5], 1 }
  0xf0   :  { %372 = vsyncpa [#allocation5 + $0x1], 1 }

</bundles_post_ra>
